<compile_context>
chip_gen: v7x
topology: tpu7x:2x2x1
jax: 0.10.0
libtpu: 0.0.40
codegen_flags: <defaults>
</compile_context>

<pallas_src>
import jax
import jax.numpy as jnp
from jax import lax
from jax.experimental import pallas as pl
from jax.experimental.pallas import tpu as pltpu


def _round_up(x, m):
    return (x + m - 1) // m * m


def _embed_sum_kernel(idx_ref, emb_ref, ctx_ref):
    """ctx[b] = sum_c emb[idx[b, c]] via one-hot counts @ emb on the MXU.

    idx_ref : VMEM (TB, C)    int32  -- context word indices for this batch tile
    emb_ref : VMEM (TVE, Hp)  f32    -- embedding rows [ke*TVE, (ke+1)*TVE)
    ctx_ref : VMEM (TB, Hp)   f32    -- accumulator (resident across the ke axis)
    """
    ke = pl.program_id(1)
    TB, C = idx_ref.shape
    TVE = emb_ref.shape[0]

    idx = idx_ref[...]                                            # (TB, C)
    vocab_ids = lax.broadcasted_iota(jnp.int32, (TB, TVE), 1) + ke * TVE
    counts = jnp.zeros((TB, TVE), jnp.float32)
    for c in range(C):                                            # C small & static
        counts = counts + (vocab_ids == idx[:, c:c + 1]).astype(jnp.float32)

    partial = jnp.dot(counts, emb_ref[...], preferred_element_type=jnp.float32)

    @pl.when(ke == 0)
    def _():
        ctx_ref[...] = jnp.zeros_like(ctx_ref)

    ctx_ref[...] += partial


def _linear_kernel(ctx_ref, w_ref, b_ref, out_ref):
    """logits tile = (TB, Hp) @ (Hp, TV) + (1, TV)."""
    out_ref[...] = (
        jnp.dot(ctx_ref[...], w_ref[...], preferred_element_type=jnp.float32)
        + b_ref[...]
    )


def simple_cbow_forward(inputs, emb, w_lin, b_lin):
    """inputs: (B, C) int; emb: (V, H); w_lin: (V, H) PyTorch nn.Linear layout; b_lin: (V,)."""
    B, C = inputs.shape
    V, H = emb.shape

    # Tile sizes: sublane-aligned batch tile, lane-dense vocab tiles, H padded to 128.
    TB = min(256, _round_up(B, 8))
    TV = min(2048, _round_up(V, 128))        # output-vocab tile (linear)
    TVE = min(512, _round_up(V, 128))        # embedding-vocab tile (gather)
    Hp = _round_up(H, 128)

    B_pad = _round_up(B, TB)
    Ve_pad = _round_up(V, TVE)
    Vo_pad = _round_up(V, TV)

    # Zero-pad (glue).  Padded batch rows / vocab cols are sliced off at the end;
    # indices in [V, Ve_pad) or OOB simply match a zero one-hot row (contribute 0).
    idx = jnp.pad(inputs.astype(jnp.int32), ((0, B_pad - B), (0, 0)))
    emb_p = jnp.pad(emb.astype(jnp.float32), ((0, Ve_pad - V), (0, Hp - H)))
    # Pre-transpose the linear weight once: PyTorch (V, H) -> (Hp, Vo_pad) (K, N) layout.
    w_t = jnp.pad(jnp.transpose(w_lin.astype(jnp.float32)),
                  ((0, Hp - H), (0, Vo_pad - V)))
    b_p = jnp.pad(b_lin.astype(jnp.float32), (0, Vo_pad - V)).reshape(1, Vo_pad)

    nb = B_pad // TB
    nke = Ve_pad // TVE
    nj = Vo_pad // TV

    # --- Kernel 1: context sum (B_pad, Hp), accumulated over embedding-vocab tiles ---
    ctx = pl.pallas_call(
        _embed_sum_kernel,
        out_shape=jax.ShapeDtypeStruct((B_pad, Hp), jnp.float32),
        grid=(nb, nke),
        in_specs=[
            pl.BlockSpec((TB, C), lambda i, ke: (i, 0)),
            pl.BlockSpec((TVE, Hp), lambda i, ke: (ke, 0)),
        ],
        out_specs=pl.BlockSpec((TB, Hp), lambda i, ke: (i, 0)),
        compiler_params=pltpu.CompilerParams(
            dimension_semantics=("parallel", "arbitrary")),
    )(idx, emb_p)

    # --- Kernel 2: logits = ctx @ W^T + b, vocab-outer / batch-inner ---
    # Weight index_map depends only on j -> each weight tile fetched once and
    # reused across all batch tiles; both axes parallel for megacore sharding.
    out = pl.pallas_call(
        _linear_kernel,
        out_shape=jax.ShapeDtypeStruct((B_pad, Vo_pad), jnp.float32),
        grid=(nj, nb),
        in_specs=[
            pl.BlockSpec((TB, Hp), lambda j, i: (i, 0)),
            pl.BlockSpec((Hp, TV), lambda j, i: (0, j)),
            pl.BlockSpec((1, TV), lambda j, i: (0, j)),
        ],
        out_specs=pl.BlockSpec((TB, TV), lambda j, i: (i, j)),
        compiler_params=pltpu.CompilerParams(
            dimension_semantics=("parallel", "parallel")),
    )(ctx, w_t, b_p)

    return out[:B, :V]


if __name__ == "__main__":
    # Small shapes consistent with the module: CBOW with a context window.
    vocab_size = 16
    hidden_size = 32
    batch = 2
    context = 4   # number of context words summed over dim=1

    key = jax.random.PRNGKey(0)
    k_emb, k_w, k_b, k_idx = jax.random.split(key, 4)

    # nn.Embedding default init ~ N(0, 1); nn.Linear ~ U(-1/sqrt(H), 1/sqrt(H)).
    emb = jax.random.normal(k_emb, (vocab_size, hidden_size), dtype=jnp.float32)
    bound = 1.0 / jnp.sqrt(jnp.float32(hidden_size))
    w_lin = jax.random.uniform(k_w, (vocab_size, hidden_size),
                               minval=-bound, maxval=bound, dtype=jnp.float32)
    b_lin = jax.random.uniform(k_b, (vocab_size,),
                               minval=-bound, maxval=bound, dtype=jnp.float32)

    inputs = jax.random.randint(k_idx, (batch, context), 0, vocab_size, dtype=jnp.int32)

    out = simple_cbow_forward(inputs, emb, w_lin, b_lin)
    out = jax.block_until_ready(out)

    # Pure-JAX reference check of the same forward semantics.
    ref = jnp.take(emb, inputs, axis=0).sum(axis=1) @ w_lin.T + b_lin
    assert out.shape == (batch, vocab_size)
    assert jnp.allclose(out, ref, atol=1e-4, rtol=1e-4), "mismatch vs reference"

    print("KERNEL_OK")
</pallas_src>

<mosaic_0001>
module attributes {stable_mosaic.version = 11 : i64} {
  func.func @_embed_sum_kernel(%arg0: i32, %arg1: i32, %arg2: memref<8x4xi32, #tpu.memory_space<vmem>>, %arg3: memref<128x128xf32, #tpu.memory_space<vmem>>, %arg4: memref<8x128xf32, #tpu.memory_space<vmem>>) attributes {dimension_semantics = [#tpu.dimension_semantics<parallel>, #tpu.dimension_semantics<arbitrary>], iteration_bounds = array<i64: 1, 1>, scalar_prefetch = 0 : i64, scratch_operands = 0 : i64, tpu.core_type = #tpu.core_type<tc>, window_params = [{transform_indices = @transform_0, window_bounds = array<i64: 8, 4>}, {transform_indices = @transform_1, window_bounds = array<i64: 128, 128>}, {transform_indices = @transform_2, window_bounds = array<i64: 8, 128>}]} {
    %c0 = arith.constant 0 : index
    %c0_0 = arith.constant 0 : index
    %0 = vector.load %arg2[%c0, %c0_0] : memref<8x4xi32, #tpu.memory_space<vmem>>, vector<8x4xi32>
    %1 = tpu.iota {dimensions = array<i32: 1>} : vector<8x128xi32>
    %c128_i32 = arith.constant 128 : i32
    %2 = arith.muli %arg1, %c128_i32 : i32
    %3 = vector.broadcast %2 : i32 to vector<8x128xi32>
    %4 = arith.addi %1, %3 : vector<8x128xi32>
    %cst = arith.constant 0.000000e+00 : f32
    %5 = vector.broadcast %cst : f32 to vector<8x128xf32>
    %6 = vector.extract_strided_slice %0 {offsets = [0, 0], sizes = [8, 1], strides = [1, 1]} : vector<8x4xi32> to vector<8x1xi32>
    %7 = vector.broadcast %6 : vector<8x1xi32> to vector<8x128xi32>
    %8 = arith.cmpi eq, %4, %7 : vector<8x128xi32>
    %9 = arith.extui %8 : vector<8x128xi1> to vector<8x128xi32>
    %10 = arith.sitofp %9 : vector<8x128xi32> to vector<8x128xf32>
    %11 = arith.addf %5, %10 : vector<8x128xf32>
    %12 = vector.extract_strided_slice %0 {offsets = [0, 1], sizes = [8, 1], strides = [1, 1]} : vector<8x4xi32> to vector<8x1xi32>
    %13 = vector.broadcast %12 : vector<8x1xi32> to vector<8x128xi32>
    %14 = arith.cmpi eq, %4, %13 : vector<8x128xi32>
    %15 = arith.extui %14 : vector<8x128xi1> to vector<8x128xi32>
    %16 = arith.sitofp %15 : vector<8x128xi32> to vector<8x128xf32>
    %17 = arith.addf %11, %16 : vector<8x128xf32>
    %18 = vector.extract_strided_slice %0 {offsets = [0, 2], sizes = [8, 1], strides = [1, 1]} : vector<8x4xi32> to vector<8x1xi32>
    %19 = vector.broadcast %18 : vector<8x1xi32> to vector<8x128xi32>
    %20 = arith.cmpi eq, %4, %19 : vector<8x128xi32>
    %21 = arith.extui %20 : vector<8x128xi1> to vector<8x128xi32>
    %22 = arith.sitofp %21 : vector<8x128xi32> to vector<8x128xf32>
    %23 = arith.addf %17, %22 : vector<8x128xf32>
    %24 = vector.extract_strided_slice %0 {offsets = [0, 3], sizes = [8, 1], strides = [1, 1]} : vector<8x4xi32> to vector<8x1xi32>
    %25 = vector.broadcast %24 : vector<8x1xi32> to vector<8x128xi32>
    %26 = arith.cmpi eq, %4, %25 : vector<8x128xi32>
    %27 = arith.extui %26 : vector<8x128xi1> to vector<8x128xi32>
    %28 = arith.sitofp %27 : vector<8x128xi32> to vector<8x128xf32>
    %29 = arith.addf %23, %28 : vector<8x128xf32>
    %c0_1 = arith.constant 0 : index
    %c0_2 = arith.constant 0 : index
    %30 = vector.load %arg3[%c0_1, %c0_2] : memref<128x128xf32, #tpu.memory_space<vmem>>, vector<128x128xf32>
    %cst_3 = arith.constant dense<0.000000e+00> : vector<8x128xf32>
    %31 = tpu.matmul %29, %30, %cst_3 {dimension_numbers = #tpu.dot_dimension_numbers<[1], [0], [0], [1], [0, 0, 1, 1], [], []>} : vector<8x128xf32>, vector<128x128xf32>, vector<8x128xf32> -> vector<8x128xf32>
    %c0_i32 = arith.constant 0 : i32
    %32 = arith.cmpi eq, %arg1, %c0_i32 : i32
    %33 = arith.extui %32 : i1 to i32
    %c0_i32_4 = arith.constant 0 : i32
    %34 = arith.cmpi ne, %33, %c0_i32_4 : i32
    scf.if %34 {
      %cst_9 = arith.constant 0.000000e+00 : f32
      %38 = vector.broadcast %cst_9 : f32 to vector<8x128xf32>
      %c0_10 = arith.constant 0 : index
      %c0_11 = arith.constant 0 : index
      %39 = vector.load %arg4[%c0_10, %c0_11] : memref<8x128xf32, #tpu.memory_space<vmem>>, vector<8x128xf32>
      tpu.vector_store %arg4[%c0_10, %c0_11], %38 {strides = array<i32>} : memref<8x128xf32, #tpu.memory_space<vmem>>, vector<8x128xf32>,
    } else {
    }
    %c0_5 = arith.constant 0 : index
    %c0_6 = arith.constant 0 : index
    %35 = vector.load %arg4[%c0_5, %c0_6] : memref<8x128xf32, #tpu.memory_space<vmem>>, vector<8x128xf32>
    %36 = arith.addf %35, %31 : vector<8x128xf32>
    %c0_7 = arith.constant 0 : index
    %c0_8 = arith.constant 0 : index
    %37 = vector.load %arg4[%c0_7, %c0_8] : memref<8x128xf32, #tpu.memory_space<vmem>>, vector<8x128xf32>
    tpu.vector_store %arg4[%c0_7, %c0_8], %36 {strides = array<i32>} : memref<8x128xf32, #tpu.memory_space<vmem>>, vector<8x128xf32>,
    return
  }
  func.func @transform_0(%arg0: i32, %arg1: i32) -> (i32, i32) {
    %c0_i32 = arith.constant 0 : i32
    %c0_i32_0 = arith.constant 0 : i32
    return %arg0, %c0_i32 : i32, i32
  }
  func.func @transform_1(%arg0: i32, %arg1: i32) -> (i32, i32) {
    %c0_i32 = arith.constant 0 : i32
    %c0_i32_0 = arith.constant 0 : i32
    return %arg1, %c0_i32 : i32, i32
  }
  func.func @transform_2(%arg0: i32, %arg1: i32) -> (i32, i32) {
    %c0_i32 = arith.constant 0 : i32
    %c0_i32_0 = arith.constant 0 : i32
    return %arg0, %c0_i32 : i32, i32
  }
}

</mosaic_0001>

<bundles_post_ra>
// kernel: tpu_custom_call.1
= control target key start
LH: loop header
LB: loop body
LE: loop exit
PB: predicated region body
PF: predicated region fallthrough
CT: control target
= control target key end

     0   :  { %7 = vsyncpa [#allocation3], 0  ;;  %s366_s0 = inlined_call_operand.vmem [shape: s32[8,4], index: 0, kind: input, shape index: {}]   ;;  %s367_s1 = inlined_call_operand.hbm [shape: f32[128,128], index: 1, kind: input, shape index: {}]   ;;  %s368_s2 = inlined_call_operand.hbm [shape: f32[8,128], index: 2, kind: output, shape index: {}]  }
   0x1   :  { %8 = vsyncpa [#allocation4], 0  ;;  %s313_s9 = smov [#allocation2]   ;;  %s265_s13 = scalar_lea.hbm %s367_s1, 2048 }
   0x2   :  { %s16_s10 = sshll.u32 %s313_s9, 4  ;;  %p266_p0 = scmp.ne.s32.totalorder %s367_s1, %s265_s13  ;;  %s17_s10 = int_to_ptr.vmem [resolvable:$true] %s16_s10 }
   0x3   :  { %p269_p1 = scmp.lt.u32.totalorder %s265_s13, %s367_s1 }
   0x5   :  { %p271_p2 = pnand %p269_p1, %p266_p0 }
   0x7   :  { %274 = shalt.err (!%p271_p2)
}
   0x8   :  { %s275_s18 = scalar_lea.vmem %s17_s10, 2048  ;;  %p280_p4 = scmp.lt.s32.totalorder %s17_s10, %s17_s10 }
   0x9   :  { %p276_p3 = scmp.ne.s32.totalorder %s17_s10, %s275_s18  ;;  %p281_p5 = scmp.lt.s32.totalorder %s275_s18, %s275_s18 }
   0xb   :  { %p282_p6 = por %p281_p5, %p280_p4 }
   0xd   :  { %p283_p7 = pnand %p282_p6, %p276_p3 }
   0xf   :  { %286 = shalt.err (!%p283_p7)
}
  0x10   :  { %s314_s19 = smov 128   ;;  %s315_s20 = smov 8  }
  0x11   :  { %22 = dma.hbm_to_vmem [thread:$0]  %s367_s1, 2048, %s17_s10, [#allocation3], %s314_s19, %s314_s19, %s315_s20  }
  0x12   :  { %309 = dma.done.wait [#allocation3], 2048  }
  0x13   :  { %310 = vsyncadd [#allocation3], 4294965248  ;;  %v316_v0 = vmov 0   ;;  %v317_v1 = vmov 2   ;;  %v318_v2 = vmov 0.0|0.0   ;;  %v26_v3 = vld [vmem:[%s366_s0] sm:$0xff]  ;;  %v27_v31 = vlaneseq }
  0x14   :  { %260 = vset.pattern.permute.xlu0 %v316_v0  ;;  %262 = vset.pattern.permute.xlu1 %v317_v1  ;;  %v60_v4 = vld [vmem:[#allocation2] sm:$0xff]  ;;  %v61_v5 = vld [vmem:[#allocation2 + $0x8] sm:$0xff]  ;;  %v62_v7 = vld [vmem:[#allocation2 + $0x10] sm:$0xff]  ;;  %v319_v12 = vmov 1   ;;  %v320_v13 = vmov 3   ;;  %vm321_vm0 = vmmov 0  }
  0x15   :  { %225 = vmatprep.subr.bf16.mxu0 %v318_v2  ;;  %33 = vperm.xlu0 %260, %v26_v3   ;;  %v226_v6 = vpack.c.bf16 %v61_v5, %v60_v4  ;;  %v63_v8 = vld [vmem:[#allocation2 + $0x18] sm:$0xff]  ;;  %v64_v10 = vld [vmem:[#allocation2 + $0x20] sm:$0xff]  ;;  %v65_v11 = vld [vmem:[#allocation2 + $0x28] sm:$0xff]  ;;  %v322_v20 = vmov 0.0   ;;  %v28_v32 = vand.u32 127, %v27_v31  ;;  %s323_s0 = smov [#allocation5]  }
  0x16   :  { %47 = vperm.xlu1 %262, %v26_v3   ;;  %v229_v9 = vpack.c.bf16 %v63_v8, %v62_v7  ;;  %v232_v14 = vpack.c.bf16 %v65_v11, %v64_v10  ;;  %v66_v15 = vld [vmem:[#allocation2 + $0x30] sm:$0xff]  ;;  %v67_v16 = vld [vmem:[#allocation2 + $0x38] sm:$0xff]  ;;  %v68_v18 = vld [vmem:[#allocation2 + $0x40] sm:$0xff]  ;;  %222 = vmatprep.mubr.msk.f32.mxu0 %vm321_vm0, %v322_v20  ;;  %s160_s1 = sshll.u32 %s323_s0, 4  ;;  %s161_s1 = int_to_ptr.vmem [resolvable:$true] %s160_s1 }
  0x17   :  { %227 = vmatpush3.bf16.msra.mxu0 %v226_v6  ;;  %v235_v17 = vpack.c.bf16 %v67_v16, %v66_v15  ;;  %v69_v19 = vld [vmem:[#allocation2 + $0x48] sm:$0xff]  ;;  %v70_v22 = vld [vmem:[#allocation2 + $0x50] sm:$0xff]  ;;  %v71_v23 = vld [vmem:[#allocation2 + $0x58] sm:$0xff]  ;;  %s287_s25 = scalar_lea.vmem %s161_s1, 128  ;;  %p292_p9 = scmp.lt.s32.totalorder %s161_s1, %s161_s1 }
  0x18   :  { %228 = vmatprep.subr.bf16.mxu0 %v318_v2  ;;  %v238_v21 = vpack.c.bf16 %v69_v19, %v68_v18  ;;  %v241_v24 = vpack.c.bf16 %v71_v23, %v70_v22  ;;  %v72_v25 = vld [vmem:[#allocation2 + $0x60] sm:$0xff]  ;;  %v73_v26 = vld [vmem:[#allocation2 + $0x68] sm:$0xff]  ;;  %v74_v28 = vld [vmem:[#allocation2 + $0x70] sm:$0xff]  ;;  %p288_p8 = scmp.ne.s32.totalorder %s161_s1, %s287_s25  ;;  %p293_p10 = scmp.lt.s32.totalorder %s287_s25, %s287_s25 }
  0x19   :  { %261 = vset.pattern.permute.xlu0 %v319_v12  ;;  %v244_v27 = vpack.c.bf16 %v73_v26, %v72_v25  ;;  %v75_v29 = vld [vmem:[#allocation2 + $0x78] sm:$0xff] }
  0x1a   :  { %263 = vset.pattern.permute.xlu1 %v320_v13  ;;  %40 = vperm.xlu0 %261, %v26_v3   ;;  %v247_v30 = vpack.c.bf16 %v75_v29, %v74_v28  ;;  %p294_p11 = por %p293_p10, %p292_p9 }
  0x1b   :  { %54 = vperm.xlu1 %263, %v26_v3   ;;  %230 = vmatpush3.bf16.msra.mxu0 %v229_v9 }
  0x1c   :  { %231 = vmatprep.subr.bf16.mxu0 %v318_v2  ;;  %p295_p12 = pnand %p294_p11, %p288_p8 }
  0x1e   :  { %264 = vset.pattern.permute.xlu0 %v320_v13 }
  0x1f   :  { %233 = vmatpush3.bf16.msra.mxu0 %v232_v14 }
  0x20   :  { %234 = vmatprep.subr.bf16.mxu0 %v318_v2 }
  0x23   :  { %236 = vmatpush3.bf16.msra.mxu0 %v235_v17 }
  0x24   :  { %237 = vmatprep.subr.bf16.mxu0 %v318_v2 }
  0x27   :  { %239 = vmatpush3.bf16.msra.mxu0 %v238_v21 }
  0x28   :  { %240 = vmatprep.subr.bf16.mxu0 %v318_v2 }
  0x2b   :  { %242 = vmatpush3.bf16.msra.mxu0 %v241_v24 }
  0x2c   :  { %243 = vmatprep.subr.bf16.mxu0 %v318_v2 }
  0x2f   :  { %245 = vmatpush3.bf16.msra.mxu0 %v244_v27 }
  0x30   :  { %246 = vmatprep.subr.bf16.mxu0 %v318_v2 }
  0x33   :  { %248 = vmatpush3.bf16.msra.mxu0 %v247_v30 }
  0x94   :  { %v34_v33 = vpop.permute.xlu0 %33 }
  0x95   :  { %v48_v34 = vpop.permute.xlu1 %47  ;;  %vm35_vm1 = vcmp.eq.s32.totalorder %v28_v32, %v34_v33 }
  0x96   :  { %vm49_vm2 = vcmp.eq.s32.totalorder %v28_v32, %v48_v34  ;;  %v169_v37 = vsel %vm35_vm1, 1.0, %v322_v20 }
  0x97   :  { %v171_v40 = vsel %vm49_vm2, 1.0, %v322_v20 }
  0x99   :  { %v41_v35 = vpop.permute.xlu0 %40 }
  0x9a   :  { %v55_v36 = vpop.permute.xlu1 %54  ;;  %vm42_vm3 = vcmp.eq.s32.totalorder %v28_v32, %v41_v35 }
  0x9b   :  { %vm56_vm4 = vcmp.eq.s32.totalorder %v28_v32, %v55_v36  ;;  %v170_v38 = vsel %vm42_vm3, 1.0, %v322_v20 }
  0x9c   :  { %v45_v39 = vadd.f32 %v170_v38, %v169_v37  ;;  %v172_v41 = vsel %vm56_vm4, 1.0, %v322_v20 }
  0x9e   :  { %v52_v42 = vadd.f32 %v171_v40, %v45_v39 }
  0xa0   :  { %v59_v43 = vadd.f32 %v172_v41, %v52_v42 }
  0xa2   :  { %223 = vmatmul.mubr.f32.vlgmr.msra.gmra.mrb[0].mxu0 %v59_v43 }
 0x175   :  { %v142_v44 = vpop.f32.mrb[0].mxu0 }
 0x176   :  { %v224_v45 = vpop.f32.mrb[1].mxu0  ;;  %153 = vst [vmem:[#allocation5] sm:$0xff] %v142_v44 }
 0x177   :  { %298 = shalt.err (!%p295_p12)
}
 0x178   :  { %s299_s28 = scalar_lea.hbm %s368_s2, 128 }
 0x179   :  { %p300_p13 = scmp.ne.s32.totalorder %s368_s2, %s299_s28  ;;  %p303_p0 = scmp.lt.u32.totalorder %s299_s28, %s368_s2 }
 0x17b   :  { %p305_p1 = pnand %p303_p0, %p300_p13 }
 0x17d   :  { %308 = shalt.err (!%p305_p1)
}
 0x17e   :  { %163 = dma.vmem_to_hbm [thread:$0]  %s161_s1, 128, %s368_s2, [#allocation4]  }
 0x17f   :  { %311 = dma.done.wait [#allocation4], 128  }
 0x180   :  { %312 = vsyncadd [#allocation4], 4294967168 }
 0x181   :  { %167 = vsyncpa [#allocation3], 1 }
 0x182   :  { %168 = vsyncpa [#allocation4], 1 }

</bundles_post_ra>
